<compile_context>
chip_gen: v6e
topology: v6e:2x2x1
jax: 0.10.0
libtpu: 0.0.40
codegen_flags: <defaults>
</compile_context>

<pallas_src>
import math
import functools

import jax
import jax.numpy as jnp
from jax.experimental import pallas as pl
from jax.experimental.pallas import tpu as pltpu


def mha_kernel(q_ref, k_ref, v_ref,
               wq_ref, bq_ref, wk_ref, bk_ref,
               wv_ref, bv_ref, wo_ref, bo_ref,
               o_ref, y_scr, *, head_num, seq_len):
    # q_ref/k_ref/v_ref: (rows, F) with rows = batch_tile * seq_len.
    rows, F = q_ref.shape
    D = F // head_num
    bt = rows // seq_len

    def linear_relu(x, w_ref, b_ref):
        # Weights are pre-transposed on the host: x @ W_t + b, f32 accumulation.
        y = jnp.dot(x, w_ref[...], preferred_element_type=jnp.float32)
        return jnp.maximum(y + b_ref[...], 0.0)

    # Q projection weight/bias already carry the 1/sqrt(D) attention scale.
    q = linear_relu(q_ref[...].astype(jnp.float32), wq_ref, bq_ref)  # (rows, F)
    k = linear_relu(k_ref[...].astype(jnp.float32), wk_ref, bk_ref)  # (rows, F)
    v = linear_relu(v_ref[...].astype(jnp.float32), wv_ref, bv_ref)  # (rows, F)

    def to_heads(x):
        # (bt*S, H*D) -> (bt*H, S, D) using static slices + a leading-axis stack
        # (avoids minor-dim reshape / 4-D transpose inside the kernel).
        return jnp.stack(
            [x[b * seq_len:(b + 1) * seq_len, h * D:(h + 1) * D]
             for b in range(bt) for h in range(head_num)],
            axis=0)

    qh = to_heads(q)  # (bt*H, S, D)
    kh = to_heads(k)
    vh = to_heads(v)

    # Head-batched scaled dot-product attention (scale pre-folded into qh).
    s = jnp.einsum('bqd,bkd->bqk', qh, kh,
                   preferred_element_type=jnp.float32)               # (bt*H, S, S)
    s = s - jnp.max(s, axis=-1, keepdims=True)                       # XLU reduce
    e = jnp.exp(s)                                                   # EUP
    inv_denom = pl.reciprocal(jnp.sum(e, axis=-1, keepdims=True), approx=True)
    attn = e * inv_denom
    y = jnp.einsum('bqk,bkd->bqd', attn, vh,
                   preferred_element_type=jnp.float32)               # (bt*H, S, D)

    # Merge heads back to (rows, F) through a VMEM scratch (no lane-domain
    # concatenation of live values).
    for b in range(bt):
        for h in range(head_num):
            y_scr[b * seq_len:(b + 1) * seq_len, h * D:(h + 1) * D] = \
                y[b * head_num + h]

    out = linear_relu(y_scr[...], wo_ref, bo_ref)                    # (rows, F)
    o_ref[...] = out.astype(o_ref.dtype)


def multi_head_attention(q, k, v, params, head_num, batch_tile=None):
    """q, k, v: (B, S, F). params: dict with wq,bq,wk,bk,wv,bv,wo,bo (nn.Linear layout)."""
    B, S, F = q.shape
    assert F % head_num == 0
    D = F // head_num
    scale = 1.0 / math.sqrt(D)

    # Pick a batch tile so each grid step feeds the MXU plenty of rows
    # (target ~256 rows), without exceeding the batch.  For tiny batches this
    # collapses the grid to one step; on v7x one could trade rows for >=2 grid
    # steps to occupy both TensorCores.
    if batch_tile is None:
        batch_tile = min(B, max(1, 256 // S))
        while B % batch_tile:
            batch_tile -= 1
    assert B % batch_tile == 0
    rows = batch_tile * S

    # Host-side prep: flatten (B,S,F)->(B*S,F), pre-transpose weights, 2-D biases,
    # fold the attention scale into the Q projection.
    q2 = q.reshape(B * S, F)
    k2 = k.reshape(B * S, F)
    v2 = v.reshape(B * S, F)
    wq_t, bq = (params["wq"] * scale).T, (params["bq"] * scale).reshape(1, F)
    wk_t, bk = params["wk"].T, params["bk"].reshape(1, F)
    wv_t, bv = params["wv"].T, params["bv"].reshape(1, F)
    wo_t, bo = params["wo"].T, params["bo"].reshape(1, F)

    seq_spec = pl.BlockSpec((rows, F), lambda b: (b, 0))
    w_spec = pl.BlockSpec((F, F), lambda b: (0, 0))
    b_spec = pl.BlockSpec((1, F), lambda b: (0, 0))

    kernel = functools.partial(mha_kernel, head_num=head_num, seq_len=S)

    out2 = pl.pallas_call(
        kernel,
        out_shape=jax.ShapeDtypeStruct((B * S, F), q.dtype),
        grid_spec=pltpu.PrefetchScalarGridSpec(
            num_scalar_prefetch=0,
            grid=(B // batch_tile,),
            in_specs=[seq_spec, seq_spec, seq_spec,
                      w_spec, b_spec, w_spec, b_spec,
                      w_spec, b_spec, w_spec, b_spec],
            out_specs=seq_spec,
            scratch_shapes=[pltpu.VMEM((rows, F), jnp.float32)],
        ),
        compiler_params=pltpu.CompilerParams(
            dimension_semantics=("parallel",)),
    )(q2, k2, v2, wq_t, bq, wk_t, bk, wv_t, bv, wo_t, bo)

    return out2.reshape(B, S, F)


def reference_mha(q, k, v, params, head_num):
    """Plain-JAX reference matching the PyTorch forward exactly (mask=None)."""
    B, S, F = q.shape
    D = F // head_num

    def lin_relu(x, w, b):
        return jnp.maximum(x @ w.T + b, 0.0)

    qa = lin_relu(q, params["wq"], params["bq"])
    ka = lin_relu(k, params["wk"], params["bk"])
    va = lin_relu(v, params["wv"], params["bv"])

    def to_batches(x):
        return x.reshape(B, S, head_num, D).transpose(0, 2, 1, 3).reshape(B * head_num, S, D)

    qh, kh, vh = to_batches(qa), to_batches(ka), to_batches(va)
    scores = jnp.einsum("bqd,bkd->bqk", qh, kh) / math.sqrt(D)
    attn = jax.nn.softmax(scores, axis=-1)
    y = jnp.einsum("bqk,bkd->bqd", attn, vh)
    y = y.reshape(B, head_num, S, D).transpose(0, 2, 1, 3).reshape(B, S, F)
    return lin_relu(y, params["wo"], params["bo"])


if __name__ == "__main__":
    B, S, F, H = 2, 8, 32, 4  # batch, seq, in_features, head_num

    key = jax.random.PRNGKey(0)
    keys = jax.random.split(key, 12)

    # reset_parameters: weights ~ N(0, 0.1); biases: small uniform (nn.Linear default).
    bound = 1.0 / math.sqrt(F)
    params = {
        "wq": 0.1 * jax.random.normal(keys[0], (F, F), jnp.float32),
        "wk": 0.1 * jax.random.normal(keys[1], (F, F), jnp.float32),
        "wv": 0.1 * jax.random.normal(keys[2], (F, F), jnp.float32),
        "wo": 0.1 * jax.random.normal(keys[3], (F, F), jnp.float32),
        "bq": jax.random.uniform(keys[4], (F,), jnp.float32, -bound, bound),
        "bk": jax.random.uniform(keys[5], (F,), jnp.float32, -bound, bound),
        "bv": jax.random.uniform(keys[6], (F,), jnp.float32, -bound, bound),
        "bo": jax.random.uniform(keys[7], (F,), jnp.float32, -bound, bound),
    }

    q = jax.random.normal(keys[8], (B, S, F), jnp.float32)
    k = jax.random.normal(keys[9], (B, S, F), jnp.float32)
    v = jax.random.normal(keys[10], (B, S, F), jnp.float32)

    out = multi_head_attention(q, k, v, params, H)
    out = jax.block_until_ready(out)

    ref = reference_mha(q, k, v, params, H)
    assert out.shape == (B, S, F)
    # Tolerance slightly relaxed because softmax normalization uses the EUP's
    # approximate reciprocal (pl.reciprocal(..., approx=True)).
    assert jnp.allclose(out, ref, atol=5e-3, rtol=5e-3)

    print("KERNEL_OK")
</pallas_src>

<mosaic_0001>
module attributes {stable_mosaic.version = 11 : i64} {
  func.func @mha_kernel(%arg0: i32, %arg1: memref<16x32xf32, #tpu.memory_space<vmem>>, %arg2: memref<16x32xf32, #tpu.memory_space<vmem>>, %arg3: memref<16x32xf32, #tpu.memory_space<vmem>>, %arg4: memref<32x32xf32, #tpu.memory_space<vmem>>, %arg5: memref<1x32xf32, #tpu.memory_space<vmem>>, %arg6: memref<32x32xf32, #tpu.memory_space<vmem>>, %arg7: memref<1x32xf32, #tpu.memory_space<vmem>>, %arg8: memref<32x32xf32, #tpu.memory_space<vmem>>, %arg9: memref<1x32xf32, #tpu.memory_space<vmem>>, %arg10: memref<32x32xf32, #tpu.memory_space<vmem>>, %arg11: memref<1x32xf32, #tpu.memory_space<vmem>>, %arg12: memref<16x32xf32, #tpu.memory_space<vmem>>, %arg13: memref<16x32xf32, #tpu.memory_space<vmem>>) attributes {dimension_semantics = [#tpu.dimension_semantics<parallel>], iteration_bounds = array<i64: 1>, scalar_prefetch = 0 : i64, scratch_operands = 1 : i64, tpu.core_type = #tpu.core_type<tc>, window_params = [{transform_indices = @transform_0, window_bounds = array<i64: 16, 32>}, {transform_indices = @transform_1, window_bounds = array<i64: 16, 32>}, {transform_indices = @transform_2, window_bounds = array<i64: 16, 32>}, {pipeline_mode = #tpu.pipeline_mode<synchronous>, transform_indices = @transform_3, window_bounds = array<i64: 32, 32>}, {pipeline_mode = #tpu.pipeline_mode<synchronous>, transform_indices = @transform_4, window_bounds = array<i64: 1, 32>}, {pipeline_mode = #tpu.pipeline_mode<synchronous>, transform_indices = @transform_5, window_bounds = array<i64: 32, 32>}, {pipeline_mode = #tpu.pipeline_mode<synchronous>, transform_indices = @transform_6, window_bounds = array<i64: 1, 32>}, {pipeline_mode = #tpu.pipeline_mode<synchronous>, transform_indices = @transform_7, window_bounds = array<i64: 32, 32>}, {pipeline_mode = #tpu.pipeline_mode<synchronous>, transform_indices = @transform_8, window_bounds = array<i64: 1, 32>}, {pipeline_mode = #tpu.pipeline_mode<synchronous>, transform_indices = @transform_9, window_bounds = array<i64: 32, 32>}, {pipeline_mode = #tpu.pipeline_mode<synchronous>, transform_indices = @transform_10, window_bounds = array<i64: 1, 32>}, {transform_indices = @transform_11, window_bounds = array<i64: 16, 32>}]} {
    %c0 = arith.constant 0 : index
    %c0_0 = arith.constant 0 : index
    %0 = vector.load %arg1[%c0, %c0_0] : memref<16x32xf32, #tpu.memory_space<vmem>>, vector<16x32xf32>
    %c0_1 = arith.constant 0 : index
    %c0_2 = arith.constant 0 : index
    %1 = vector.load %arg4[%c0_1, %c0_2] : memref<32x32xf32, #tpu.memory_space<vmem>>, vector<32x32xf32>
    %cst = arith.constant dense<0.000000e+00> : vector<16x32xf32>
    %2 = tpu.matmul %0, %1, %cst {dimension_numbers = #tpu.dot_dimension_numbers<[1], [0], [0], [1], [0, 0, 1, 1], [], []>} : vector<16x32xf32>, vector<32x32xf32>, vector<16x32xf32> -> vector<16x32xf32>
    %c0_3 = arith.constant 0 : index
    %c0_4 = arith.constant 0 : index
    %3 = vector.load %arg5[%c0_3, %c0_4] : memref<1x32xf32, #tpu.memory_space<vmem>>, vector<1x32xf32>
    %4 = vector.broadcast %3 : vector<1x32xf32> to vector<16x32xf32>
    %5 = arith.addf %2, %4 : vector<16x32xf32>
    %cst_5 = arith.constant 0.000000e+00 : f32
    %6 = vector.broadcast %cst_5 : f32 to vector<16x32xf32>
    %7 = arith.maximumf %5, %6 : vector<16x32xf32>
    %c0_6 = arith.constant 0 : index
    %c0_7 = arith.constant 0 : index
    %8 = vector.load %arg2[%c0_6, %c0_7] : memref<16x32xf32, #tpu.memory_space<vmem>>, vector<16x32xf32>
    %c0_8 = arith.constant 0 : index
    %c0_9 = arith.constant 0 : index
    %9 = vector.load %arg6[%c0_8, %c0_9] : memref<32x32xf32, #tpu.memory_space<vmem>>, vector<32x32xf32>
    %cst_10 = arith.constant dense<0.000000e+00> : vector<16x32xf32>
    %10 = tpu.matmul %8, %9, %cst_10 {dimension_numbers = #tpu.dot_dimension_numbers<[1], [0], [0], [1], [0, 0, 1, 1], [], []>} : vector<16x32xf32>, vector<32x32xf32>, vector<16x32xf32> -> vector<16x32xf32>
    %c0_11 = arith.constant 0 : index
    %c0_12 = arith.constant 0 : index
    %11 = vector.load %arg7[%c0_11, %c0_12] : memref<1x32xf32, #tpu.memory_space<vmem>>, vector<1x32xf32>
    %12 = vector.broadcast %11 : vector<1x32xf32> to vector<16x32xf32>
    %13 = arith.addf %10, %12 : vector<16x32xf32>
    %cst_13 = arith.constant 0.000000e+00 : f32
    %14 = vector.broadcast %cst_13 : f32 to vector<16x32xf32>
    %15 = arith.maximumf %13, %14 : vector<16x32xf32>
    %c0_14 = arith.constant 0 : index
    %c0_15 = arith.constant 0 : index
    %16 = vector.load %arg3[%c0_14, %c0_15] : memref<16x32xf32, #tpu.memory_space<vmem>>, vector<16x32xf32>
    %c0_16 = arith.constant 0 : index
    %c0_17 = arith.constant 0 : index
    %17 = vector.load %arg8[%c0_16, %c0_17] : memref<32x32xf32, #tpu.memory_space<vmem>>, vector<32x32xf32>
    %cst_18 = arith.constant dense<0.000000e+00> : vector<16x32xf32>
    %18 = tpu.matmul %16, %17, %cst_18 {dimension_numbers = #tpu.dot_dimension_numbers<[1], [0], [0], [1], [0, 0, 1, 1], [], []>} : vector<16x32xf32>, vector<32x32xf32>, vector<16x32xf32> -> vector<16x32xf32>
    %c0_19 = arith.constant 0 : index
    %c0_20 = arith.constant 0 : index
    %19 = vector.load %arg9[%c0_19, %c0_20] : memref<1x32xf32, #tpu.memory_space<vmem>>, vector<1x32xf32>
    %20 = vector.broadcast %19 : vector<1x32xf32> to vector<16x32xf32>
    %21 = arith.addf %18, %20 : vector<16x32xf32>
    %cst_21 = arith.constant 0.000000e+00 : f32
    %22 = vector.broadcast %cst_21 : f32 to vector<16x32xf32>
    %23 = arith.maximumf %21, %22 : vector<16x32xf32>
    %24 = vector.extract_strided_slice %7 {offsets = [0, 0], sizes = [8, 8], strides = [1, 1]} : vector<16x32xf32> to vector<8x8xf32>
    %25 = vector.extract_strided_slice %7 {offsets = [0, 8], sizes = [8, 8], strides = [1, 1]} : vector<16x32xf32> to vector<8x8xf32>
    %26 = vector.extract_strided_slice %7 {offsets = [0, 16], sizes = [8, 8], strides = [1, 1]} : vector<16x32xf32> to vector<8x8xf32>
    %27 = vector.extract_strided_slice %7 {offsets = [0, 24], sizes = [8, 8], strides = [1, 1]} : vector<16x32xf32> to vector<8x8xf32>
    %28 = vector.extract_strided_slice %7 {offsets = [8, 0], sizes = [8, 8], strides = [1, 1]} : vector<16x32xf32> to vector<8x8xf32>
    %29 = vector.extract_strided_slice %7 {offsets = [8, 8], sizes = [8, 8], strides = [1, 1]} : vector<16x32xf32> to vector<8x8xf32>
    %30 = vector.extract_strided_slice %7 {offsets = [8, 16], sizes = [8, 8], strides = [1, 1]} : vector<16x32xf32> to vector<8x8xf32>
    %31 = vector.extract_strided_slice %7 {offsets = [8, 24], sizes = [8, 8], strides = [1, 1]} : vector<16x32xf32> to vector<8x8xf32>
    %32 = vector.shape_cast %24 : vector<8x8xf32> to vector<1x8x8xf32>
    %33 = vector.shape_cast %25 : vector<8x8xf32> to vector<1x8x8xf32>
    %34 = vector.shape_cast %26 : vector<8x8xf32> to vector<1x8x8xf32>
    %35 = vector.shape_cast %27 : vector<8x8xf32> to vector<1x8x8xf32>
    %36 = vector.shape_cast %28 : vector<8x8xf32> to vector<1x8x8xf32>
    %37 = vector.shape_cast %29 : vector<8x8xf32> to vector<1x8x8xf32>
    %38 = vector.shape_cast %30 : vector<8x8xf32> to vector<1x8x8xf32>
    %39 = vector.shape_cast %31 : vector<8x8xf32> to vector<1x8x8xf32>
    %40 = tpu.concatenate %32, %33, %34, %35, %36, %37, %38, %39 in 0 : vector<1x8x8xf32>, vector<1x8x8xf32>, vector<1x8x8xf32>, vector<1x8x8xf32>, vector<1x8x8xf32>, vector<1x8x8xf32>, vector<1x8x8xf32>, vector<1x8x8xf32> -> vector<8x8x8xf32>
    %41 = vector.extract_strided_slice %15 {offsets = [0, 0], sizes = [8, 8], strides = [1, 1]} : vector<16x32xf32> to vector<8x8xf32>
    %42 = vector.extract_strided_slice %15 {offsets = [0, 8], sizes = [8, 8], strides = [1, 1]} : vector<16x32xf32> to vector<8x8xf32>
    %43 = vector.extract_strided_slice %15 {offsets = [0, 16], sizes = [8, 8], strides = [1, 1]} : vector<16x32xf32> to vector<8x8xf32>
    %44 = vector.extract_strided_slice %15 {offsets = [0, 24], sizes = [8, 8], strides = [1, 1]} : vector<16x32xf32> to vector<8x8xf32>
    %45 = vector.extract_strided_slice %15 {offsets = [8, 0], sizes = [8, 8], strides = [1, 1]} : vector<16x32xf32> to vector<8x8xf32>
    %46 = vector.extract_strided_slice %15 {offsets = [8, 8], sizes = [8, 8], strides = [1, 1]} : vector<16x32xf32> to vector<8x8xf32>
    %47 = vector.extract_strided_slice %15 {offsets = [8, 16], sizes = [8, 8], strides = [1, 1]} : vector<16x32xf32> to vector<8x8xf32>
    %48 = vector.extract_strided_slice %15 {offsets = [8, 24], sizes = [8, 8], strides = [1, 1]} : vector<16x32xf32> to vector<8x8xf32>
    %49 = vector.shape_cast %41 : vector<8x8xf32> to vector<1x8x8xf32>
    %50 = vector.shape_cast %42 : vector<8x8xf32> to vector<1x8x8xf32>
    %51 = vector.shape_cast %43 : vector<8x8xf32> to vector<1x8x8xf32>
    %52 = vector.shape_cast %44 : vector<8x8xf32> to vector<1x8x8xf32>
    %53 = vector.shape_cast %45 : vector<8x8xf32> to vector<1x8x8xf32>
    %54 = vector.shape_cast %46 : vector<8x8xf32> to vector<1x8x8xf32>
    %55 = vector.shape_cast %47 : vector<8x8xf32> to vector<1x8x8xf32>
    %56 = vector.shape_cast %48 : vector<8x8xf32> to vector<1x8x8xf32>
    %57 = tpu.concatenate %49, %50, %51, %52, %53, %54, %55, %56 in 0 : vector<1x8x8xf32>, vector<1x8x8xf32>, vector<1x8x8xf32>, vector<1x8x8xf32>, vector<1x8x8xf32>, vector<1x8x8xf32>, vector<1x8x8xf32>, vector<1x8x8xf32> -> vector<8x8x8xf32>
    %58 = vector.extract_strided_slice %23 {offsets = [0, 0], sizes = [8, 8], strides = [1, 1]} : vector<16x32xf32> to vector<8x8xf32>
    %59 = vector.extract_strided_slice %23 {offsets = [0, 8], sizes = [8, 8], strides = [1, 1]} : vector<16x32xf32> to vector<8x8xf32>
    %60 = vector.extract_strided_slice %23 {offsets = [0, 16], sizes = [8, 8], strides = [1, 1]} : vector<16x32xf32> to vector<8x8xf32>
    %61 = vector.extract_strided_slice %23 {offsets = [0, 24], sizes = [8, 8], strides = [1, 1]} : vector<16x32xf32> to vector<8x8xf32>
    %62 = vector.extract_strided_slice %23 {offsets = [8, 0], sizes = [8, 8], strides = [1, 1]} : vector<16x32xf32> to vector<8x8xf32>
    %63 = vector.extract_strided_slice %23 {offsets = [8, 8], sizes = [8, 8], strides = [1, 1]} : vector<16x32xf32> to vector<8x8xf32>
    %64 = vector.extract_strided_slice %23 {offsets = [8, 16], sizes = [8, 8], strides = [1, 1]} : vector<16x32xf32> to vector<8x8xf32>
    %65 = vector.extract_strided_slice %23 {offsets = [8, 24], sizes = [8, 8], strides = [1, 1]} : vector<16x32xf32> to vector<8x8xf32>
    %66 = vector.shape_cast %58 : vector<8x8xf32> to vector<1x8x8xf32>
    %67 = vector.shape_cast %59 : vector<8x8xf32> to vector<1x8x8xf32>
    %68 = vector.shape_cast %60 : vector<8x8xf32> to vector<1x8x8xf32>
    %69 = vector.shape_cast %61 : vector<8x8xf32> to vector<1x8x8xf32>
    %70 = vector.shape_cast %62 : vector<8x8xf32> to vector<1x8x8xf32>
    %71 = vector.shape_cast %63 : vector<8x8xf32> to vector<1x8x8xf32>
    %72 = vector.shape_cast %64 : vector<8x8xf32> to vector<1x8x8xf32>
    %73 = vector.shape_cast %65 : vector<8x8xf32> to vector<1x8x8xf32>
    %74 = tpu.concatenate %66, %67, %68, %69, %70, %71, %72, %73 in 0 : vector<1x8x8xf32>, vector<1x8x8xf32>, vector<1x8x8xf32>, vector<1x8x8xf32>, vector<1x8x8xf32>, vector<1x8x8xf32>, vector<1x8x8xf32>, vector<1x8x8xf32> -> vector<8x8x8xf32>
    "tpu.trace_start"() <{level = 10 : i32, message = "bqd,bkd->bqk"}> : () -> ()
    %cst_22 = arith.constant dense<0.000000e+00> : vector<8x8x8xf32>
    %75 = tpu.matmul %40, %57, %cst_22 {dimension_numbers = #tpu.dot_dimension_numbers<[2], [2], [1], [1], [0, 0, 0, 1, 1, 1], [0], [0]>} : vector<8x8x8xf32>, vector<8x8x8xf32>, vector<8x8x8xf32> -> vector<8x8x8xf32>
    "tpu.trace_stop"() : () -> ()
    %cst_23 = arith.constant dense<0xFF800000> : vector<8x8xf32>
    %76 = vector.multi_reduction <maximumf>, %75, %cst_23 [2] : vector<8x8x8xf32> to vector<8x8xf32>
    %77 = vector.shape_cast %76 : vector<8x8xf32> to vector<8x8x1xf32>
    %78 = vector.broadcast %77 : vector<8x8x1xf32> to vector<8x8x8xf32>
    %79 = arith.subf %75, %78 : vector<8x8x8xf32>
    %80 = math.exp %79 : vector<8x8x8xf32>
    %cst_24 = arith.constant dense<0.000000e+00> : vector<8x8xf32>
    %81 = vector.multi_reduction <add>, %80, %cst_24 [2] : vector<8x8x8xf32> to vector<8x8xf32>
    %82 = vector.shape_cast %81 : vector<8x8xf32> to vector<8x8x1xf32>
    %83 = tpu.reciprocal %82 {approx = true} : vector<8x8x1xf32> -> vector<8x8x1xf32>
    %84 = vector.broadcast %83 : vector<8x8x1xf32> to vector<8x8x8xf32>
    %85 = arith.mulf %80, %84 : vector<8x8x8xf32>
    "tpu.trace_start"() <{level = 10 : i32, message = "bqk,bkd->bqd"}> : () -> ()
    %cst_25 = arith.constant dense<0.000000e+00> : vector<8x8x8xf32>
    %86 = tpu.matmul %85, %74, %cst_25 {dimension_numbers = #tpu.dot_dimension_numbers<[2], [1], [1], [2], [0, 0, 0, 1, 1, 2], [0], [0]>} : vector<8x8x8xf32>, vector<8x8x8xf32>, vector<8x8x8xf32> -> vector<8x8x8xf32>
    "tpu.trace_stop"() : () -> ()
    %87 = vector.extract_strided_slice %86 {offsets = [0, 0, 0], sizes = [1, 8, 8], strides = [1, 1, 1]} : vector<8x8x8xf32> to vector<1x8x8xf32>
    %88 = vector.shape_cast %87 : vector<1x8x8xf32> to vector<8x8xf32>
    %c0_26 = arith.constant 0 : index
    %c0_27 = arith.constant 0 : index
    %89 = vector.load %arg13[%c0_26, %c0_27] : memref<16x32xf32, #tpu.memory_space<vmem>>, vector<8x8xf32>
    tpu.vector_store %arg13[%c0_26, %c0_27], %88 {strides = array<i32>} : memref<16x32xf32, #tpu.memory_space<vmem>>, vector<8x8xf32>,
    %90 = vector.extract_strided_slice %86 {offsets = [1, 0, 0], sizes = [1, 8, 8], strides = [1, 1, 1]} : vector<8x8x8xf32> to vector<1x8x8xf32>
    %91 = vector.shape_cast %90 : vector<1x8x8xf32> to vector<8x8xf32>
    %c0_28 = arith.constant 0 : index
    %c8 = arith.constant 8 : index
    %92 = vector.load %arg13[%c0_28, %c8] : memref<16x32xf32, #tpu.memory_space<vmem>>, vector<8x8xf32>
    tpu.vector_store %arg13[%c0_28, %c8], %91 {strides = array<i32>} : memref<16x32xf32, #tpu.memory_space<vmem>>, vector<8x8xf32>,
    %93 = vector.extract_strided_slice %86 {offsets = [2, 0, 0], sizes = [1, 8, 8], strides = [1, 1, 1]} : vector<8x8x8xf32> to vector<1x8x8xf32>
    %94 = vector.shape_cast %93 : vector<1x8x8xf32> to vector<8x8xf32>
    %c0_29 = arith.constant 0 : index
    %c16 = arith.constant 16 : index
    %95 = vector.load %arg13[%c0_29, %c16] : memref<16x32xf32, #tpu.memory_space<vmem>>, vector<8x8xf32>
    tpu.vector_store %arg13[%c0_29, %c16], %94 {strides = array<i32>} : memref<16x32xf32, #tpu.memory_space<vmem>>, vector<8x8xf32>,
    %96 = vector.extract_strided_slice %86 {offsets = [3, 0, 0], sizes = [1, 8, 8], strides = [1, 1, 1]} : vector<8x8x8xf32> to vector<1x8x8xf32>
    %97 = vector.shape_cast %96 : vector<1x8x8xf32> to vector<8x8xf32>
    %c0_30 = arith.constant 0 : index
    %c24 = arith.constant 24 : index
    %98 = vector.load %arg13[%c0_30, %c24] : memref<16x32xf32, #tpu.memory_space<vmem>>, vector<8x8xf32>
    tpu.vector_store %arg13[%c0_30, %c24], %97 {strides = array<i32>} : memref<16x32xf32, #tpu.memory_space<vmem>>, vector<8x8xf32>,
    %99 = vector.extract_strided_slice %86 {offsets = [4, 0, 0], sizes = [1, 8, 8], strides = [1, 1, 1]} : vector<8x8x8xf32> to vector<1x8x8xf32>
    %100 = vector.shape_cast %99 : vector<1x8x8xf32> to vector<8x8xf32>
    %c8_31 = arith.constant 8 : index
    %c0_32 = arith.constant 0 : index
    %101 = vector.load %arg13[%c8_31, %c0_32] : memref<16x32xf32, #tpu.memory_space<vmem>>, vector<8x8xf32>
    tpu.vector_store %arg13[%c8_31, %c0_32], %100 {strides = array<i32>} : memref<16x32xf32, #tpu.memory_space<vmem>>, vector<8x8xf32>,
    %102 = vector.extract_strided_slice %86 {offsets = [5, 0, 0], sizes = [1, 8, 8], strides = [1, 1, 1]} : vector<8x8x8xf32> to vector<1x8x8xf32>
    %103 = vector.shape_cast %102 : vector<1x8x8xf32> to vector<8x8xf32>
    %c8_33 = arith.constant 8 : index
    %c8_34 = arith.constant 8 : index
    %104 = vector.load %arg13[%c8_33, %c8_34] : memref<16x32xf32, #tpu.memory_space<vmem>>, vector<8x8xf32>
    tpu.vector_store %arg13[%c8_33, %c8_34], %103 {strides = array<i32>} : memref<16x32xf32, #tpu.memory_space<vmem>>, vector<8x8xf32>,
    %105 = vector.extract_strided_slice %86 {offsets = [6, 0, 0], sizes = [1, 8, 8], strides = [1, 1, 1]} : vector<8x8x8xf32> to vector<1x8x8xf32>
    %106 = vector.shape_cast %105 : vector<1x8x8xf32> to vector<8x8xf32>
    %c8_35 = arith.constant 8 : index
    %c16_36 = arith.constant 16 : index
    %107 = vector.load %arg13[%c8_35, %c16_36] : memref<16x32xf32, #tpu.memory_space<vmem>>, vector<8x8xf32>
    tpu.vector_store %arg13[%c8_35, %c16_36], %106 {strides = array<i32>} : memref<16x32xf32, #tpu.memory_space<vmem>>, vector<8x8xf32>,
    %108 = vector.extract_strided_slice %86 {offsets = [7, 0, 0], sizes = [1, 8, 8], strides = [1, 1, 1]} : vector<8x8x8xf32> to vector<1x8x8xf32>
    %109 = vector.shape_cast %108 : vector<1x8x8xf32> to vector<8x8xf32>
    %c8_37 = arith.constant 8 : index
    %c24_38 = arith.constant 24 : index
    %110 = vector.load %arg13[%c8_37, %c24_38] : memref<16x32xf32, #tpu.memory_space<vmem>>, vector<8x8xf32>
    tpu.vector_store %arg13[%c8_37, %c24_38], %109 {strides = array<i32>} : memref<16x32xf32, #tpu.memory_space<vmem>>, vector<8x8xf32>,
    %c0_39 = arith.constant 0 : index
    %c0_40 = arith.constant 0 : index
    %111 = vector.load %arg13[%c0_39, %c0_40] : memref<16x32xf32, #tpu.memory_space<vmem>>, vector<16x32xf32>
    %c0_41 = arith.constant 0 : index
    %c0_42 = arith.constant 0 : index
    %112 = vector.load %arg10[%c0_41, %c0_42] : memref<32x32xf32, #tpu.memory_space<vmem>>, vector<32x32xf32>
    %cst_43 = arith.constant dense<0.000000e+00> : vector<16x32xf32>
    %113 = tpu.matmul %111, %112, %cst_43 {dimension_numbers = #tpu.dot_dimension_numbers<[1], [0], [0], [1], [0, 0, 1, 1], [], []>} : vector<16x32xf32>, vector<32x32xf32>, vector<16x32xf32> -> vector<16x32xf32>
    %c0_44 = arith.constant 0 : index
    %c0_45 = arith.constant 0 : index
    %114 = vector.load %arg11[%c0_44, %c0_45] : memref<1x32xf32, #tpu.memory_space<vmem>>, vector<1x32xf32>
    %115 = vector.broadcast %114 : vector<1x32xf32> to vector<16x32xf32>
    %116 = arith.addf %113, %115 : vector<16x32xf32>
    %cst_46 = arith.constant 0.000000e+00 : f32
    %117 = vector.broadcast %cst_46 : f32 to vector<16x32xf32>
    %118 = arith.maximumf %116, %117 : vector<16x32xf32>
    %c0_47 = arith.constant 0 : index
    %c0_48 = arith.constant 0 : index
    %119 = vector.load %arg12[%c0_47, %c0_48] : memref<16x32xf32, #tpu.memory_space<vmem>>, vector<16x32xf32>
    tpu.vector_store %arg12[%c0_47, %c0_48], %118 {strides = array<i32>} : memref<16x32xf32, #tpu.memory_space<vmem>>, vector<16x32xf32>,
    return
  }
  func.func @transform_0(%arg0: i32) -> (i32, i32) {
    %c0_i32 = arith.constant 0 : i32
    %c0_i32_0 = arith.constant 0 : i32
    return %arg0, %c0_i32 : i32, i32
  }
  func.func @transform_1(%arg0: i32) -> (i32, i32) {
    %c0_i32 = arith.constant 0 : i32
    %c0_i32_0 = arith.constant 0 : i32
    return %arg0, %c0_i32 : i32, i32
  }
  func.func @transform_2(%arg0: i32) -> (i32, i32) {
    %c0_i32 = arith.constant 0 : i32
    %c0_i32_0 = arith.constant 0 : i32
    return %arg0, %c0_i32 : i32, i32
  }
  func.func @transform_3(%arg0: i32) -> (i32, i32) {
    %c0_i32 = arith.constant 0 : i32
    %c0_i32_0 = arith.constant 0 : i32
    %c0_i32_1 = arith.constant 0 : i32
    return %c0_i32, %c0_i32_0 : i32, i32
  }
  func.func @transform_4(%arg0: i32) -> (i32, i32) {
    %c0_i32 = arith.constant 0 : i32
    %c0_i32_0 = arith.constant 0 : i32
    %c0_i32_1 = arith.constant 0 : i32
    return %c0_i32, %c0_i32_0 : i32, i32
  }
  func.func @transform_5(%arg0: i32) -> (i32, i32) {
    %c0_i32 = arith.constant 0 : i32
    %c0_i32_0 = arith.constant 0 : i32
    %c0_i32_1 = arith.constant 0 : i32
    return %c0_i32, %c0_i32_0 : i32, i32
  }
  func.func @transform_6(%arg0: i32) -> (i32, i32) {
    %c0_i32 = arith.constant 0 : i32
    %c0_i32_0 = arith.constant 0 : i32
    %c0_i32_1 = arith.constant 0 : i32
    return %c0_i32, %c0_i32_0 : i32, i32
  }
  func.func @transform_7(%arg0: i32) -> (i32, i32) {
    %c0_i32 = arith.constant 0 : i32
    %c0_i32_0 = arith.constant 0 : i32
    %c0_i32_1 = arith.constant 0 : i32
    return %c0_i32, %c0_i32_0 : i32, i32
  }
  func.func @transform_8(%arg0: i32) -> (i32, i32) {
    %c0_i32 = arith.constant 0 : i32
    %c0_i32_0 = arith.constant 0 : i32
    %c0_i32_1 = arith.constant 0 : i32
    return %c0_i32, %c0_i32_0 : i32, i32
  }
  func.func @transform_9(%arg0: i32) -> (i32, i32) {
    %c0_i32 = arith.constant 0 : i32
    %c0_i32_0 = arith.constant 0 : i32
    %c0_i32_1 = arith.constant 0 : i32
    return %c0_i32, %c0_i32_0 : i32, i32
  }
  func.func @transform_10(%arg0: i32) -> (i32, i32) {
    %c0_i32 = arith.constant 0 : i32
    %c0_i32_0 = arith.constant 0 : i32
    %c0_i32_1 = arith.constant 0 : i32
    return %c0_i32, %c0_i32_0 : i32, i32
  }
  func.func @transform_11(%arg0: i32) -> (i32, i32) {
    %c0_i32 = arith.constant 0 : i32
    %c0_i32_0 = arith.constant 0 : i32
    return %arg0, %c0_i32 : i32, i32
  }
}

</mosaic_0001>

<bundles_post_ra>
// kernel: tpu_custom_call.1
= control target key start
LH: loop header
LB: loop body
LE: loop exit
PB: predicated region body
PF: predicated region fallthrough
CT: control target
= control target key end

     0   :  { %16 = vsyncpa [#allocation4], 0  ;;  %s2598_s0 = inlined_call_operand.hbm [shape: f32[16,32], index: 0, kind: input, shape index: {}]   ;;  %s2599_s1 = inlined_call_operand.hbm [shape: f32[16,32], index: 1, kind: input, shape index: {}]   ;;  %s2600_s2 = inlined_call_operand.hbm [shape: f32[16,32], index: 2, kind: input, shape index: {}]   ;;  %s2601_s3 = inlined_call_operand.hbm [shape: f32[32,32], index: 3, kind: input, shape index: {}]   ;;  %s2602_s4 = inlined_call_operand.vmem [shape: f32[1,32], index: 4, kind: input, shape index: {}]   ;;  %s2603_s5 = inlined_call_operand.hbm [shape: f32[32,32], index: 5, kind: input, shape index: {}]   ;;  %s2604_s6 = inlined_call_operand.vmem [shape: f32[1,32], index: 6, kind: input, shape index: {}]   ;;  %s2605_s7 = inlined_call_operand.hbm [shape: f32[32,32], index: 7, kind: input, shape index: {}]   ;;  %s2606_s8 = inlined_call_operand.vmem [shape: f32[1,32], index: 8, kind: input, shape index: {}]   ;;  %s2607_s9 = inlined_call_operand.hbm [shape: f32[32,32], index: 9, kind: input, shape index: {}]   ;;  %s2608_s10 = inlined_call_operand.vmem [shape: f32[1,32], index: 10, kind: input, shape index: {}]   ;;  %s2609_s11 = inlined_call_operand.hbm [shape: f32[16,32], index: 11, kind: output, shape index: {}]  }
   0x1   :  { %17 = vsyncpa [#allocation7], 0 }
   0x2   :  { %18 = vsyncpa [#allocation10], 0 }
   0x3   :  { %19 = vsyncpa [#allocation13], 0 }
   0x4   :  { %20 = vsyncpa [#allocation5], 0  ;;  %s2324_s17 = smov [#allocation6]   ;;  %s2325_s19 = smov [#allocation9]  }
   0x5   :  { %s38_s18 = sshll.u32 %s2324_s17, 4  ;;  %s62_s20 = sshll.u32 %s2325_s19, 4  ;;  %s39_s18 = int_to_ptr.vmem [resolvable:$true] %s38_s18  ;;  %s63_s20 = int_to_ptr.vmem [resolvable:$true] %s62_s20 }
   0x6   :  { %s2162_s21 = scalar_lea.vmem %s39_s18, 256  ;;  %p2167_p1 = scmp.lt.s32.totalorder %s39_s18, %s39_s18 }
   0x7   :  { %p2163_p0 = scmp.ne.s32.totalorder %s39_s18, %s2162_s21  ;;  %p2168_p2 = scmp.lt.s32.totalorder %s2162_s21, %s2162_s21 }
   0x9   :  { %p2169_p3 = por %p2168_p2, %p2167_p1 }
   0xb   :  { %p2170_p4 = pnand %p2169_p3, %p2163_p0 }
   0xd   :  { %2173 = shalt.err (!%p2170_p4)
}
   0xe   :  { %s2326_s22 = smov 128   ;;  %s2327_s23 = smov 8  }
   0xf   :  { %44 = dma.hbm_to_vmem [thread:$0]  %s2599_s1, 256, %s39_s18, [#allocation7], %s2326_s22, %s2326_s22, %s2327_s23  }
  0x10   :  { %s2182_s26 = scalar_lea.vmem %s63_s20, 512  ;;  %p2187_p6 = scmp.lt.s32.totalorder %s63_s20, %s63_s20 }
  0x11   :  { %p2183_p5 = scmp.ne.s32.totalorder %s63_s20, %s2182_s26  ;;  %p2188_p7 = scmp.lt.s32.totalorder %s2182_s26, %s2182_s26 }
  0x13   :  { %p2189_p8 = por %p2188_p7, %p2187_p6 }
  0x15   :  { %p2190_p9 = pnand %p2189_p8, %p2183_p5 }
  0x17   :  { %2193 = shalt.err (!%p2190_p9)
}
  0x18   :  { %68 = dma.hbm_to_vmem [thread:$0]  %s2601_s3, 512, %s63_s20, [#allocation10], %s2326_s22, %s2326_s22, %s2327_s23  }
  0x19   :  { %s2328_s29 = smov [#allocation12]   ;;  %s2329_s12 = smov [#allocation3]  }
  0x1a   :  { %s90_s30 = sshll.u32 %s2328_s29, 4  ;;  %s26_s13 = sshll.u32 %s2329_s12, 4  ;;  %s91_s30 = int_to_ptr.vmem [resolvable:$true] %s90_s30  ;;  %s27_s13 = int_to_ptr.vmem [resolvable:$true] %s26_s13 }
  0x1b   :  { %s2202_s1 = scalar_lea.vmem %s91_s30, 512  ;;  %p2207_p11 = scmp.lt.s32.totalorder %s91_s30, %s91_s30 }
  0x1c   :  { %p2203_p10 = scmp.ne.s32.totalorder %s91_s30, %s2202_s1  ;;  %p2208_p12 = scmp.lt.s32.totalorder %s2202_s1, %s2202_s1 }
  0x1e   :  { %p2209_p13 = por %p2208_p12, %p2207_p11 }
  0x20   :  { %p2210_p0 = pnand %p2209_p13, %p2203_p10 }
  0x22   :  { %2213 = shalt.err (!%p2210_p0)
}
  0x23   :  { %96 = dma.hbm_to_vmem [thread:$0]  %s2605_s7, 512, %s91_s30, [#allocation13], %s2326_s22, %s2326_s22, %s2327_s23  }
  0x24   :  { %s2222_s3 = scalar_lea.vmem %s27_s13, 256  ;;  %p2227_p2 = scmp.lt.s32.totalorder %s27_s13, %s27_s13 }
  0x25   :  { %p2223_p1 = scmp.ne.s32.totalorder %s27_s13, %s2222_s3  ;;  %p2228_p3 = scmp.lt.s32.totalorder %s2222_s3, %s2222_s3 }
  0x27   :  { %p2229_p4 = por %p2228_p3, %p2227_p2 }
  0x29   :  { %p2230_p5 = pnand %p2229_p4, %p2223_p1 }
  0x2b   :  { %2233 = shalt.err (!%p2230_p5)
}
  0x2c   :  { %32 = dma.hbm_to_vmem [thread:$0]  %s2598_s0, 256, %s27_s13, [#allocation4], %s2326_s22, %s2326_s22, %s2327_s23  }
  0x2d   :  { %s2330_s18 = smov [#allocation8]   ;;  %s2331_s20 = smov [#allocation11]  }
  0x2e   :  { %s50_s19 = sshll.u32 %s2330_s18, 4  ;;  %s76_s21 = sshll.u32 %s2331_s20, 4  ;;  %s51_s19 = int_to_ptr.vmem [resolvable:$true] %s50_s19  ;;  %s77_s21 = int_to_ptr.vmem [resolvable:$true] %s76_s21 }
  0x2f   :  { %s2242_s7 = scalar_lea.vmem %s51_s19, 256  ;;  %p2247_p7 = scmp.lt.s32.totalorder %s51_s19, %s51_s19 }
  0x30   :  { %p2243_p6 = scmp.ne.s32.totalorder %s51_s19, %s2242_s7  ;;  %p2248_p8 = scmp.lt.s32.totalorder %s2242_s7, %s2242_s7 }
  0x32   :  { %p2249_p9 = por %p2248_p8, %p2247_p7 }
  0x34   :  { %p2250_p10 = pnand %p2249_p9, %p2243_p6 }
  0x36   :  { %2253 = shalt.err (!%p2250_p10)
}
  0x37   :  { %56 = dma.hbm_to_vmem [thread:$0]  %s2600_s2, 256, %s51_s19, [#allocation7], %s2326_s22, %s2326_s22, %s2327_s23  }
  0x38   :  { %s2262_s0 = scalar_lea.vmem %s77_s21, 512  ;;  %p2267_p12 = scmp.lt.s32.totalorder %s77_s21, %s77_s21 }
  0x39   :  { %p2263_p11 = scmp.ne.s32.totalorder %s77_s21, %s2262_s0  ;;  %p2268_p13 = scmp.lt.s32.totalorder %s2262_s0, %s2262_s0 }
  0x3b   :  { %p2269_p0 = por %p2268_p13, %p2267_p12 }
  0x3d   :  { %p2270_p1 = pnand %p2269_p0, %p2263_p11 }
  0x3f   :  { %2273 = shalt.err (!%p2270_p1)
}
  0x40   :  { %82 = dma.hbm_to_vmem [thread:$0]  %s2603_s5, 512, %s77_s21, [#allocation10], %s2326_s22, %s2326_s22, %s2327_s23  }
  0x41   :  { %s2332_s28 = smov [#allocation14]  }
  0x42   :  { %s104_s29 = sshll.u32 %s2332_s28, 4  ;;  %s105_s29 = int_to_ptr.vmem [resolvable:$true] %s104_s29 }
  0x43   :  { %s2282_s30 = scalar_lea.vmem %s105_s29, 512  ;;  %p2287_p3 = scmp.lt.s32.totalorder %s105_s29, %s105_s29 }
  0x44   :  { %p2283_p2 = scmp.ne.s32.totalorder %s105_s29, %s2282_s30  ;;  %p2288_p4 = scmp.lt.s32.totalorder %s2282_s30, %s2282_s30 }
  0x46   :  { %p2289_p5 = por %p2288_p4, %p2287_p3 }
  0x48   :  { %p2290_p6 = pnand %p2289_p5, %p2283_p2 }
  0x4a   :  { %2293 = shalt.err (!%p2290_p6)
}
  0x4b   :  { %110 = dma.hbm_to_vmem [thread:$0]  %s2607_s9, 512, %s105_s29, [#allocation13], %s2326_s22, %s2326_s22, %s2327_s23  }
  0x4c   :  { %2314 = dma.done.wait [#allocation4], 256  }
  0x4d   :  { %2315 = vsyncadd [#allocation4], 4294967040 }
  0x4e   :  { %2316 = dma.done.wait [#allocation7], 512  }
  0x4f   :  { %2317 = vsyncadd [#allocation7], 4294966784 }
  0x50   :  { %2318 = dma.done.wait [#allocation10], 1024  }
  0x51   :  { %2319 = vsyncadd [#allocation10], 4294966272 }
  0x52   :  { %2320 = dma.done.wait [#allocation13], 1024  }
  0x53   :  { %2321 = vsyncadd [#allocation13], 4294966272  ;;  %v236_v0 = vld [vmem:[#allocation11 + $0x18] sm:$0xff]  ;;  %v235_v2 = vld [vmem:[#allocation11 + $0x10] sm:$0xff]  ;;  %vm147_vm0 = vcmask 261120   ;;  %v2333_v18 = vmov 0.0  }
  0x54   :  { %v139_v1 = vld [vmem:[#allocation9 + $0x18] sm:$0xff]  ;;  %1992 = vmatprep.subr.mxu1 %v236_v0  ;;  %v138_v3 = vld [vmem:[#allocation9 + $0x10] sm:$0xff]  ;;  %v234_v4 = vld [vmem:[#allocation11 + $0x8] sm:$0xff]  ;;  %vm2334_vm1 = vmmov 0   ;;  %vm471_vm2 = vcmask 64512   ;;  %s2337_s14 = smov 104  }
  0x55   :  { %1981 = vmatprep.subr.mxu0 %v139_v1  ;;  %1993 = vmatpush3.msra.mxu1 %v236_v0  ;;  %v137_v5 = vld [vmem:[#allocation9 + $0x8] sm:$0xff]  ;;  %v233_v6 = vld [vmem:[#allocation11] sm:$0xff]  ;;  %v134_v10 = vld [vmem:[#allocation3] sm:$0xff]  ;;  %s2339_s16 = smov 24   ;;  %vm1741_vm3 = vcmask 130112   ;;  %vm1747_vm4 = vcmask 195712  }
  0x56   :  { %1982 = vmatpush3.msra.mxu0 %v139_v1  ;;  %1994 = vmatprep.subr.mxu1 %v235_v2  ;;  %v231_v7 = vld [vmem:[#allocation6] sm:$0xff]  ;;  %v232_v9 = vld [vmem:[#allocation6 + $0x8] sm:$0xff]  ;;  %v332_v11 = vld [vmem:[#allocation12 + $0x18] sm:$0xff]  ;;  %vm1753_vm5 = vcmask 261312   ;;  %s2340_s19 = smov [#allocation15]  }
  0x57   :  { %1983 = vmatprep.subr.mxu0 %v138_v3  ;;  %1995 = vmatpush3.msra.mxu1 %v235_v2  ;;  %v136_v8 = vld [vmem:[#allocation9] sm:$0xff]  ;;  %v135_v12 = vld [vmem:[#allocation3 + $0x8] sm:$0xff]  ;;  %v331_v13 = vld [vmem:[#allocation12 + $0x10] sm:$0xff]  ;;  %s1874_s20 = sshll.u32 %s2340_s19, 4  ;;  %s1875_s20 = int_to_ptr.vmem [resolvable:$true] %s1874_s20 }
  0x58   :  { %1984 = vmatpush3.msra.mxu0 %v138_v3  ;;  %1996 = vmatprep.subr.mxu1 %v234_v4  ;;  %v330_v14 = vld [vmem:[#allocation12 + $0x8] sm:$0xff]  ;;  %v329_v15 = vld [vmem:[#allocation12] sm:$0xff]  ;;  %v327_v16 = vld [vmem:[#allocation8] sm:$0xff]  ;;  %s2294_s21 = scalar_lea.vmem %s1875_s20, 256  ;;  %p2299_p8 = scmp.lt.s32.totalorder %s1875_s20, %s1875_s20 }
  0x59   :  { %1985 = vmatprep.subr.mxu0 %v137_v5  ;;  %1997 = vmatpush3.msra.mxu1 %v234_v4  ;;  %v328_v17 = vld [vmem:[#allocation8 + $0x8] sm:$0xff]  ;;  %v1892_v19 = vld [vmem:[%s2604_s6] ss:$0 sm:$0xff]  ;;  %s2335_s6 = smov 112   ;;  %p2295_p7 = scmp.ne.s32.totalorder %s1875_s20, %s2294_s21 }
  0x5a   :  { %1986 = vmatpush3.msra.mxu0 %v137_v5  ;;  %1998 = vmatprep.subr.mxu1 %v233_v6  ;;  %v1889_v21 = vld [vmem:[%s2602_s4] ss:$0 sm:$0xff]  ;;  %s2336_s4 = smov 120   ;;  %p2300_p9 = scmp.lt.s32.totalorder %s2294_s21, %s2294_s21 }
  0x5b   :  { %2000 = vmatprep.mubr.msk.f32.mxu1 %vm147_vm0, %v231_v7  ;;  %1999 = vmatpush3.msra.mxu1 %v233_v6  ;;  %v1895_v33 = vld [vmem:[%s2606_s8] ss:$0 sm:$0xff]  ;;  %s2338_s8 = smov 16  }
  0x5c   :  { %1987 = vmatprep.subr.mxu0 %v136_v8  ;;  %2001 = vmatmul.mubr.msk.f32.vlgmr.msra.gmra.mxu1 %vm147_vm0, %v232_v9  ;;  %p2301_p10 = por %p2300_p9, %p2299_p8 }
  0x5d   :  { %1988 = vmatpush3.msra.mxu0 %v136_v8  ;;  %1989 = vmatprep.mubr.msk.f32.mxu0 %vm147_vm0, %v134_v10 }
  0x5e   :  { %2003 = vmatprep.subr.mxu0 %v332_v11  ;;  %1990 = vmatmul.mubr.msk.f32.vlgmr.msra.gmra.mxu0 %vm147_vm0, %v135_v12  ;;  %p2302_p11 = pnand %p2301_p10, %p2295_p7 }
  0x5f   :  { %2004 = vmatpush3.msra.mxu0 %v332_v11  ;;  %2011 = vmatprep.mubr.msk.f32.mxu0 %vm147_vm0, %v327_v16 }
  0x60   :  { %2005 = vmatprep.subr.mxu0 %v331_v13  ;;  %2014 = vmatprep.subr.mxu1 %v2333_v18 }
  0x61   :  { %2006 = vmatpush3.msra.mxu0 %v331_v13  ;;  %2016 = vmatprep.mubr.msk.f32.mxu1 %vm2334_vm1, %v2333_v18 }
  0x62   :  { %2007 = vmatprep.subr.mxu0 %v330_v14 }
  0x63   :  { %2008 = vmatpush3.msra.mxu0 %v330_v14 }
  0x64   :  { %2009 = vmatprep.subr.mxu0 %v329_v15 }
  0x65   :  { %2010 = vmatpush3.msra.mxu0 %v329_v15 }
  0x66   :  { %2012 = vmatmul.mubr.msk.f32.vlgmr.msra.gmra.mxu0 %vm147_vm0, %v328_v17  ;;  %2034 = vmatprep.subr.mxu0 %v2333_v18 }
  0x67   :  { %2036 = vmatprep.mubr.msk.f32.mxu0 %vm2334_vm1, %v2333_v18 }
 0x11c   :  { %v2002_v20 = vpop.f32.mrf.mxu1 }
 0x11d   :  { %v322_v22 = vadd.f32 %v2002_v20, %v1892_v19 }
 0x11e   :  { %v1991_v23 = vpop.f32.mrf.mxu0  ;;  %v316_v24 = vpop.f32.mrf.mxu1 }
 0x11f   :  { %v326_v25 = vmax.f32 %v322_v22, 0.0  ;;  %v226_v26 = vadd.f32 %v1991_v23, %v1889_v21  ;;  %v317_v27 = vadd.f32 %v1892_v19, %v316_v24 }
 0x120   :  { %v220_v28 = vpop.f32.mrf.mxu0 }
 0x121   :  { %v230_v29 = vmax.f32 %v226_v26, 0.0  ;;  %v325_v30 = vmax.f32 %v317_v27, 0.0  ;;  %v221_v31 = vadd.f32 %v1889_v21, %v220_v28  ;;  %2035 = vmatpush3.xpose.msk.msra.mxu0 %vm471_vm2, %v326_v25 }
 0x122   :  { %2044 = vmatprep.subr.mxu0 %v2333_v18 }
 0x123   :  { %v229_v32 = vmax.f32 %v221_v31, 0.0  ;;  %440 = vrot.lane.b32.xlu1 %v325_v30, %s2335_s6  ;;  %438 = vrot.lane.b32.xlu0 %v325_v30, %s2336_s4 }
 0x124   :  { %2015 = vmatpush3.xpose.msk.msra.mxu1 %vm471_vm2, %v325_v30  ;;  %2037 = vmatmul.mubr.msk.f32.vlgmr.msra.gmra.mxu0 %vm471_vm2, %v230_v29 }
 0x125   :  { %2019 = vmatprep.subr.mxu1 %v2333_v18  ;;  %2046 = vmatprep.mubr.msk.f32.mxu0 %vm2334_vm1, %v2333_v18 }
 0x126   :  { %v2013_v34 = vpop.f32.mrf.mxu0 }
 0x127   :  { %2017 = vmatmul.mubr.msk.f32.vlgmr.msra.gmra.mxu1 %vm471_vm2, %v229_v32  ;;  %426 = vrot.lane.b32.xlu1 %v229_v32, %s2335_s6  ;;  %v2486_v35 = vadd.f32 %v2013_v34, %v1895_v33 }
 0x128   :  { %424 = vrot.lane.b32.xlu0 %v229_v32, %s2336_s4  ;;  %2021 = vmatprep.mubr.msk.f32.mxu1 %vm2334_vm1, %v2333_v18  ;;  %v412_v44 = vpop.f32.mrf.mxu0 }
 0x129   :  { %v413_v45 = vadd.f32 %v1895_v33, %v412_v44  ;;  %v2531_v11 = vmax.f32 %v2486_v35, 0.0 }
 0x12b   :  { %431 = vrot.lane.b32.xlu1 %v230_v29, %s2336_s4  ;;  %v421_v48 = vmax.f32 %v413_v45, 0.0 }
 0x12c   :  { %442 = vrot.lane.b32.xlu0 %v325_v30, %s2337_s14 }
 0x12f   :  { %428 = vrot.lane.b32.xlu1 %v229_v32, %s2337_s14 }
 0x130   :  { %445 = vrot.lane.b32.xlu0 %v326_v25, %s2336_s4 }
 0x133   :  { %449 = vrot.lane.b32.xlu1 %v326_v25, %s2337_s14 }
 0x134   :  { %447 = vrot.lane.b32.xlu0 %v326_v25, %s2335_s6 }
 0x137   :  { %435 = vrot.lane.b32.xlu1 %v230_v29, %s2337_s14 }
 0x138   :  { %433 = vrot.lane.b32.xlu0 %v230_v29, %s2335_s6 }
 0x195   :  { %v441_v36 = vpop.permute.xlu1 %440  ;;  %v439_v37 = vpop.permute.xlu0 %438 }
 0x196   :  { %2020 = vmatpush3.xpose.msk.msra.mxu1 %vm471_vm2, %v439_v37 }
 0x197   :  { %2024 = vmatprep.subr.mxu1 %v2333_v18 }
 0x199   :  { %v427_v38 = vpop.permute.xlu1 %426 }
 0x19a   :  { %v425_v39 = vpop.permute.xlu0 %424 }
 0x19b   :  { %2022 = vmatmul.mubr.msk.f32.vlgmr.msra.gmra.mxu1 %vm471_vm2, %v425_v39 }
 0x19c   :  { %2025 = vmatpush3.xpose.msk.msra.mxu1 %vm471_vm2, %v441_v36  ;;  %2026 = vmatprep.mubr.msk.f32.mxu1 %vm2334_vm1, %v2333_v18 }
 0x19d   :  { %v432_v40 = vpop.permute.xlu1 %431  ;;  %2029 = vmatprep.subr.mxu1 %v2333_v18 }
 0x19e   :  { %v443_v41 = vpop.permute.xlu0 %442 }
 0x19f   :  { %2027 = vmatmul.mubr.msk.f32.vlgmr.msra.gmra.mxu1 %vm471_vm2, %v427_v38 }
 0x1a0   :  { %2030 = vmatpush3.xpose.msk.msra.mxu1 %vm471_vm2, %v443_v41  ;;  %2031 = vmatprep.mubr.msk.f32.mxu1 %vm2334_vm1, %v2333_v18 }
 0x1a1   :  { %v429_v42 = vpop.permute.xlu1 %428  ;;  %2039 = vmatprep.subr.mxu1 %v2333_v18 }
 0x1a2   :  { %v446_v43 = vpop.permute.xlu0 %445 }
 0x1a3   :  { %2032 = vmatmul.mubr.msk.f32.vlgmr.msra.gmra.mxu1 %vm471_vm2, %v429_v42 }
 0x1a4   :  { %2040 = vmatpush3.xpose.msk.msra.mxu1 %vm471_vm2, %v446_v43  ;;  %2041 = vmatprep.mubr.msk.f32.mxu1 %vm2334_vm1, %v2333_v18 }
 0x1a5   :  { %v450_v46 = vpop.permute.xlu1 %449  ;;  %2049 = vmatprep.subr.mxu1 %v2333_v18 }
 0x1a6   :  { %v448_v47 = vpop.permute.xlu0 %447 }
 0x1a7   :  { %2042 = vmatmul.mubr.msk.f32.vlgmr.msra.gmra.mxu1 %vm471_vm2, %v432_v40  ;;  %2045 = vmatpush3.xpose.msk.msra.mxu0 %vm471_vm2, %v448_v47 }
 0x1a8   :  { %2050 = vmatpush3.xpose.msk.msra.mxu1 %vm471_vm2, %v450_v46  ;;  %2051 = vmatprep.mubr.msk.f32.mxu1 %vm2334_vm1, %v2333_v18 }
 0x1a9   :  { %v436_v49 = vpop.permute.xlu1 %435  ;;  %2054 = vmatprep.subr.mxu0 %v2333_v18  ;;  %2059 = vmatprep.subr.mxu1 %v2333_v18 }
 0x1aa   :  { %v434_v50 = vpop.permute.xlu0 %433 }
 0x1ab   :  { %2047 = vmatmul.mubr.msk.f32.vlgmr.msra.gmra.mxu0 %vm471_vm2, %v434_v50  ;;  %2052 = vmatmul.mubr.msk.f32.vlgmr.msra.gmra.mxu1 %vm471_vm2, %v436_v49 }
 0x1ac   :  { %2055 = vmatpush3.msra.mxu0 %v421_v48  ;;  %2061 = vmatprep.mubr.msk.f32.mxu1 %vm2334_vm1, %v2333_v18 }
 0x1ad   :  { %2056 = vmatprep.mubr.msk.f32.mxu0 %vm2334_vm1, %v2333_v18  ;;  %2064 = vmatprep.subr.mxu0 %v2333_v18 }
 0x1e4   :  { %v838_v51 = vpop.f32.mrf.mxu0 }
 0x1e5   :  { %v1076_v60 = vsel %vm471_vm2, %v838_v51, -inf }
 0x1e6   :  { %v2038_v52 = vpop.f32.mrf.mxu0 }
 0x1e7   :  { %v542_v53 = vpop.f32.mrf.mxu1 }
 0x1e8   :  { %v1064_v54 = vsel %vm471_vm2, %v542_v53, -inf }
 0x1e9   :  { %1065 = vmax.xlane.f32.xlu0 %v1064_v54  ;;  %v2018_v55 = vpop.f32.mrf.mxu1 }
 0x25b   :  { %v616_v56 = vpop.f32.mrf.mxu1 }
 0x25c   :  { %v1067_v57 = vsel %vm471_vm2, %v616_v56, -inf }
 0x25d   :  { %1068 = vmax.xlane.f32.xlu1 %v1067_v57  ;;  %v2023_v58 = vpop.f32.mrf.mxu1 }
 0x25f   :  { %v690_v59 = vpop.f32.mrf.mxu1 }
 0x260   :  { %v1070_v61 = vsel %vm471_vm2, %v690_v59, -inf }
 0x261   :  { %1077 = vmax.xlane.f32.xlu1 %v1076_v60  ;;  %1071 = vmax.xlane.f32.xlu0 %v1070_v61  ;;  %v2028_v62 = vpop.f32.mrf.mxu1 }
 0x263   :  { %v764_v63 = vpop.f32.mrf.mxu1 }
 0x264   :  { %v1073_v0 = vsel %vm471_vm2, %v764_v63, -inf }
 0x265   :  { %1074 = vmax.xlane.f32.xlu0 %v1073_v0  ;;  %v2033_v1 = vpop.f32.mrf.mxu1 }
 0x267   :  { %v912_v2 = vpop.f32.mrf.mxu1 }
 0x268   :  { %v1079_v3 = vsel %vm471_vm2, %v912_v2, -inf }
 0x269   :  { %1080 = vmax.xlane.f32.xlu0 %v1079_v3  ;;  %v2043_v4 = vpop.f32.mrf.mxu1 }
 0x26b   :  { %v986_v5 = vpop.f32.mrf.mxu0  ;;  %v1060_v6 = vpop.f32.mrf.mxu1 }
 0x26c   :  { %v1082_v7 = vsel %vm471_vm2, %v986_v5, -inf  ;;  %v1085_v8 = vsel %vm471_vm2, %v1060_v6, -inf }
 0x26d   :  { %v2048_v9 = vpop.f32.mrf.mxu0  ;;  %1083 = vmax.xlane.f32.xlu1 %v1082_v7  ;;  %1086 = vmax.xlane.f32.xlu0 %v1085_v8  ;;  %v2053_v10 = vpop.f32.mrf.mxu1 }
 0x272   :  { %v1066_v12 = vpop.xlane.xlu0 %1065 }
 0x273   :  { %v1088_v15 = vsub.f32 %v542_v53, %v1066_v12 }
 0x275   :  { %v1096_v21 = vmul.f32 1.442695, %v1088_v15 }
 0x27e   :  { %452 = vrot.lane.b32.xlu1 %v421_v48, %s2336_s4 }
 0x282   :  { %458 = vrot.lane.b32.xlu1 %v421_v48, %s2337_s14 }
 0x283   :  { %455 = vrot.lane.b32.xlu0 %v421_v48, %s2335_s6 }
 0x286   :  { %462 = vrot.lane.b32.xlu1 %v2531_v11, %s2336_s4 }
 0x2e6   :  { %v1069_v13 = vpop.xlane.xlu1 %1068 }
 0x2e7   :  { %v1089_v14 = vsub.f32 %v616_v56, %v1069_v13 }
 0x2e9   :  { %v1098_v16 = vmul.f32 1.442695, %v1089_v14 }
 0x2ea   :  { %v1078_v17 = vpop.xlane.xlu1 %1077  ;;  %v1072_v19 = vpop.xlane.xlu0 %1071 }
 0x2eb   :  { %2122 = vpow2.f32 %v1098_v16  ;;  %v1092_v20 = vsub.f32 %v838_v51, %v1078_v17  ;;  %v1090_v28 = vsub.f32 %v690_v59, %v1072_v19 }
 0x2ed   :  { %v1104_v22 = vmul.f32 1.442695, %v1092_v20  ;;  %v1100_v35 = vmul.f32 1.442695, %v1090_v28 }
 0x2ee   :  { %v1075_v23 = vpop.xlane.xlu0 %1074 }
 0x2ef   :  { %2124 = vpow2.f32 %v1104_v22  ;;  %v1091_v24 = vsub.f32 %v764_v63, %v1075_v23 }
 0x2f0   :  { %2126 = vpow2.f32 %v1096_v21 }
 0x2f1   :  { %v1102_v25 = vmul.f32 1.442695, %v1091_v24 }
 0x2f2   :  { %v1081_v26 = vpop.xlane.xlu0 %1080 }
 0x2f3   :  { %2128 = vpow2.f32 %v1102_v25  ;;  %v1093_v27 = vsub.f32 %v912_v2, %v1081_v26 }
 0x2f5   :  { %v1106_v29 = vmul.f32 1.442695, %v1093_v27 }
 0x2f6   :  { %v1084_v30 = vpop.xlane.xlu1 %1083  ;;  %v1087_v31 = vpop.xlane.xlu0 %1086 }
 0x2f7   :  { %2130 = vpow2.f32 %v1106_v29  ;;  %v1094_v32 = vsub.f32 %v986_v5, %v1084_v30  ;;  %v1095_v33 = vsub.f32 %v1060_v6, %v1087_v31  ;;  %v1775_v29 = vld [vmem:[#allocation14 + $0x10] sm:$0xff] }
 0x2f8   :  { %v2123_v34 = vpop.eup %2122 }
 0x2f9   :  { %v1108_v36 = vmul.f32 1.442695, %v1094_v32  ;;  %v1110_v37 = vmul.f32 1.442695, %v1095_v33  ;;  %v1115_v38 = vsel %vm471_vm2, %v2123_v34, 0.0  ;;  %v1774_v32 = vld [vmem:[#allocation14 + $0x8] sm:$0xff] }
 0x2fa   :  { %v453_v39 = vpop.permute.xlu1 %452  ;;  %1116 = vadd.xlane.f32.xlu0 %v1115_v38  ;;  %v456_v55 = vpop.permute.xlu0 %455  ;;  %v1773_v33 = vld [vmem:[#allocation14] sm:$0xff] }
 0x2fb   :  { %2132 = vpow2.f32 %v1108_v36  ;;  %2060 = vmatpush3.msra.mxu1 %v453_v39 }
 0x2fc   :  { %v2536_v40 = vpop.eup %2124  ;;  %2134 = vpow2.f32 %v1110_v37  ;;  %2069 = vmatprep.subr.mxu1 %v2333_v18 }
 0x2fd   :  { %2136 = vpow2.f32 %v1100_v35  ;;  %v1124_v41 = vsel %vm471_vm2, %v2536_v40, 0.0  ;;  %v2127_v42 = vpop.eup %2126 }
 0x2fe   :  { %1125 = vadd.xlane.f32.xlu1 %v1124_v41  ;;  %v1112_v44 = vsel %vm471_vm2, %v2127_v42, 0.0  ;;  %v459_v54 = vpop.permute.xlu1 %458 }
 0x300   :  { %v2129_v43 = vpop.eup %2128 }
 0x301   :  { %v1121_v45 = vsel %vm471_vm2, %v2129_v43, 0.0 }
 0x302   :  { %1113 = vadd.xlane.f32.xlu1 %v1112_v44  ;;  %1122 = vadd.xlane.f32.xlu0 %v1121_v45  ;;  %v463_v56 = vpop.permute.xlu1 %462 }
 0x304   :  { %v2131_v46 = vpop.eup %2130 }
 0x305   :  { %v1127_v47 = vsel %vm471_vm2, %v2131_v46, 0.0 }
 0x306   :  { %1128 = vadd.xlane.f32.xlu0 %v1127_v47  ;;  %v1922_v47 = vld [vmem:[%s2608_s10] ss:$0 sm:$0xff] }
 0x308   :  { %v2544_v48 = vpop.eup %2132 }
 0x309   :  { %v2135_v49 = vpop.eup %2134  ;;  %v1130_v50 = vsel %vm471_vm2, %v2544_v48, 0.0 }
 0x30a   :  { %v2137_v51 = vpop.eup %2136  ;;  %1131 = vadd.xlane.f32.xlu1 %v1130_v50  ;;  %v1133_v52 = vsel %vm471_vm2, %v2135_v49, 0.0 }
 0x30b   :  { %1134 = vadd.xlane.f32.xlu0 %v1133_v52  ;;  %v1118_v53 = vsel %vm471_vm2, %v2137_v51, 0.0 }
 0x30e   :  { %1119 = vadd.xlane.f32.xlu1 %v1118_v53 }
 0x31f   :  { %468 = vrot.lane.b32.xlu1 %v2531_v11, %s2337_s14 }
 0x321   :  { %465 = vrot.lane.b32.xlu0 %v2531_v11, %s2335_s6 }
 0x383   :  { %v1117_v57 = vpop.xlane.xlu0 %1116 }
 0x384   :  { %2138 = vrcp.f32 %v1117_v57 }
 0x387   :  { %v1126_v58 = vpop.xlane.xlu1 %1125 }
 0x38b   :  { %v1114_v59 = vpop.xlane.xlu1 %1113  ;;  %v1123_v60 = vpop.xlane.xlu0 %1122 }
 0x38c   :  { %2140 = vrcp.f32 %v1114_v59 }
 0x38d   :  { %2142 = vrcp.f32 %v1123_v60 }
 0x38f   :  { %v1129_v61 = vpop.xlane.xlu0 %1128 }
 0x390   :  { %2144 = vrcp.f32 %v1129_v61 }
 0x391   :  { %v2139_v62 = vpop.eup %2138 }
 0x392   :  { %v1145_v63 = vmul.f32 %v2139_v62, %v2123_v34 }
 0x393   :  { %v1132_v0 = vpop.xlane.xlu1 %1131 }
 0x394   :  { %v1135_v1 = vpop.xlane.xlu0 %1134  ;;  %2062 = vmatmul.mubr.msk.f32.vlgmr.msra.gmra.mxu1 %vm471_vm2, %v1145_v63 }
 0x395   :  { %2146 = vrcp.f32 %v1135_v1  ;;  %2070 = vmatpush3.msra.mxu1 %v459_v54  ;;  %2071 = vmatprep.mubr.msk.f32.mxu1 %vm2334_vm1, %v2333_v18 }
 0x396   :  { %2079 = vmatprep.subr.mxu1 %v2333_v18 }
 0x397   :  { %v1120_v2 = vpop.xlane.xlu1 %1119 }
 0x398   :  { %2148 = vrcp.f32 %v1120_v2  ;;  %v466_v19 = vpop.permute.xlu0 %465 }
 0x399   :  { %v2141_v3 = vpop.eup %2140  ;;  %2150 = vrcp.f32 %v1126_v58 }
 0x39a   :  { %v2143_v4 = vpop.eup %2142  ;;  %v1144_v5 = vmul.f32 %v2141_v3, %v2127_v42  ;;  %2152 = vrcp.f32 %v1132_v0 }
 0x39b   :  { %v1147_v6 = vmul.f32 %v2143_v4, %v2129_v43  ;;  %v469_v9 = vpop.permute.xlu1 %468 }
 0x39c   :  { %2057 = vmatmul.mubr.msk.f32.vlgmr.msra.gmra.mxu0 %vm471_vm2, %v1144_v5 }
 0x39d   :  { %v2145_v7 = vpop.eup %2144  ;;  %2065 = vmatpush3.msra.mxu0 %v456_v55  ;;  %2072 = vmatmul.mubr.msk.f32.vlgmr.msra.gmra.mxu1 %vm471_vm2, %v1147_v6 }
 0x39e   :  { %2080 = vmatpush3.msra.mxu1 %v463_v56  ;;  %2081 = vmatprep.mubr.msk.f32.mxu1 %vm2334_vm1, %v2333_v18  ;;  %v1149_v8 = vmul.f32 %v2145_v7, %v2131_v46 }
 0x39f   :  { %2089 = vmatprep.subr.mxu1 %v2333_v18  ;;  %2066 = vmatprep.mubr.msk.f32.mxu0 %vm2334_vm1, %v2333_v18 }
 0x3a0   :  { %2074 = vmatprep.subr.mxu0 %v2333_v18 }
 0x3a1   :  { %2082 = vmatmul.mubr.msk.f32.vlgmr.msra.gmra.mxu1 %vm471_vm2, %v1149_v8 }
 0x3a2   :  { %v2147_v10 = vpop.eup %2146  ;;  %2090 = vmatpush3.msra.mxu1 %v469_v9  ;;  %2091 = vmatprep.mubr.msk.f32.mxu1 %vm2334_vm1, %v2333_v18 }
 0x3a3   :  { %v1151_v12 = vmul.f32 %v2147_v10, %v2135_v49 }
 0x3a5   :  { %v2149_v13 = vpop.eup %2148  ;;  %2092 = vmatmul.mubr.msk.f32.vlgmr.msra.gmra.mxu1 %vm471_vm2, %v1151_v12 }
 0x3a6   :  { %v1146_v14 = vmul.f32 %v2149_v13, %v2137_v51  ;;  %v2151_v15 = vpop.eup %2150 }
 0x3a7   :  { %v1148_v16 = vmul.f32 %v2151_v15, %v2536_v40  ;;  %v2153_v17 = vpop.eup %2152 }
 0x3a8   :  { %2067 = vmatmul.mubr.msk.f32.vlgmr.msra.gmra.mxu0 %vm471_vm2, %v1146_v14  ;;  %v1150_v20 = vmul.f32 %v2153_v17, %v2544_v48 }
 0x3a9   :  { %2075 = vmatpush3.msra.mxu0 %v2531_v11  ;;  %2076 = vmatprep.mubr.msk.f32.mxu0 %vm2334_vm1, %v2333_v18 }
 0x3aa   :  { %2084 = vmatprep.subr.mxu0 %v2333_v18 }
 0x3ac   :  { %2077 = vmatmul.mubr.msk.f32.vlgmr.msra.gmra.mxu0 %vm471_vm2, %v1148_v16 }
 0x3ad   :  { %2085 = vmatpush3.msra.mxu0 %v466_v19  ;;  %2086 = vmatprep.mubr.msk.f32.mxu0 %vm2334_vm1, %v2333_v18  ;;  %v1776_v18 = vld [vmem:[#allocation14 + $0x18] sm:$0xff] }
 0x3ae   :  { %2094 = vmatprep.subr.mxu0 %v1776_v18 }
 0x3b0   :  { %2087 = vmatmul.mubr.msk.f32.vlgmr.msra.gmra.mxu0 %vm471_vm2, %v1150_v20 }
 0x3b1   :  { %2095 = vmatpush3.msra.mxu0 %v1776_v18 }
 0x3b2   :  { %2096 = vmatprep.subr.mxu0 %v1775_v29 }
 0x3b3   :  { %2097 = vmatpush3.msra.mxu0 %v1775_v29 }
 0x3b4   :  { %2098 = vmatprep.subr.mxu0 %v1774_v32 }
 0x3b5   :  { %2099 = vmatpush3.msra.mxu0 %v1774_v32 }
 0x3b6   :  { %2100 = vmatprep.subr.mxu0 %v1773_v33 }
 0x3b7   :  { %2101 = vmatpush3.msra.mxu0 %v1773_v33 }
 0x454   :  { %v1294_v11 = vpop.f32.mrf.mxu1 }
 0x455   :  { %1738 = vrot.lane.b32.xlu0 %v1294_v11, %s2327_s23 }
 0x456   :  { %v2063_v21 = vpop.f32.mrf.mxu1 }
 0x45c   :  { %v1221_v22 = vpop.f32.mrf.mxu0 }
 0x45d   :  { %1736 = vst.msk [vmem:[#allocation2] sm:$0xff] %vm471_vm2, %v1221_v22  ;;  %v1440_v23 = vpop.f32.mrf.mxu1 }
 0x45e   :  { %v2058_v24 = vpop.f32.mrf.mxu0 }
 0x45f   :  { %v2073_v25 = vpop.f32.mrf.mxu1 }
 0x461   :  { %v1586_v26 = vpop.f32.mrf.mxu1 }
 0x462   :  { %1757 = vrot.lane.b32.xlu0 %v1586_v26, %s2327_s23 }
 0x463   :  { %v2083_v27 = vpop.f32.mrf.mxu1 }
 0x465   :  { %v1732_v28 = vpop.f32.mrf.mxu1 }
 0x467   :  { %v2093_v30 = vpop.f32.mrf.mxu1 }
 0x468   :  { %v1367_v31 = vpop.f32.mrf.mxu0 }
 0x469   :  { %1744 = vrot.lane.b32.xlu1 %v1367_v31, %s2338_s8 }
 0x46a   :  { %v2068_v34 = vpop.f32.mrf.mxu0 }
 0x46c   :  { %v1513_v35 = vpop.f32.mrf.mxu0 }
 0x46d   :  { %1755 = vst.msk [vmem:[#allocation2 + $0x8] sm:$0xff] %vm471_vm2, %v1513_v35  ;;  %1750 = vrot.lane.b32.xlu1 %v1440_v23, %s2339_s16 }
 0x46e   :  { %v2078_v36 = vpop.f32.mrf.mxu0 }
 0x470   :  { %v1659_v37 = vpop.f32.mrf.mxu0 }
 0x471   :  { %1762 = vrot.lane.b32.xlu0 %v1659_v37, %s2338_s8  ;;  %1767 = vrot.lane.b32.xlu1 %v1732_v28, %s2339_s16 }
 0x472   :  { %v2088_v38 = vpop.f32.mrf.mxu0 }
 0x4c7   :  { %v1739_v39 = vpop.permute.xlu0 %1738 }
 0x4c8   :  { %1742 = vst.msk [vmem:[#allocation2] sm:$0xff] %vm1741_vm3, %v1739_v39 }
 0x4d4   :  { %v1758_v40 = vpop.permute.xlu0 %1757 }
 0x4d5   :  { %1760 = vst.msk [vmem:[#allocation2 + $0x8] sm:$0xff] %vm1741_vm3, %v1758_v40 }
 0x4db   :  { %v1745_v41 = vpop.permute.xlu1 %1744 }
 0x4dc   :  { %1748 = vst.msk [vmem:[#allocation2] sm:$0xff] %vm1747_vm4, %v1745_v41 }
 0x4df   :  { %v1751_v42 = vpop.permute.xlu1 %1750 }
 0x4e0   :  { %1754 = vst.msk [vmem:[#allocation2] sm:$0xff] %vm1753_vm5, %v1751_v42 }
 0x4e3   :  { %v1763_v43 = vpop.permute.xlu0 %1762  ;;  %v1768_v44 = vpop.permute.xlu1 %1767 }
 0x4e4   :  { %1765 = vst.msk [vmem:[#allocation2 + $0x8] sm:$0xff] %vm1747_vm4, %v1763_v43 }
 0x4e5   :  { %1770 = vst.msk [vmem:[#allocation2 + $0x8] sm:$0xff] %vm1753_vm5, %v1768_v44 }
 0x4e7   :  { %v1771_v45 = vld [vmem:[#allocation2] sm:$0xff] }
 0x4e8   :  { %2102 = vmatprep.mubr.msk.f32.mxu0 %vm147_vm0, %v1771_v45 }
 0x4ec   :  { %v1772_v46 = vld [vmem:[#allocation2 + $0x8] sm:$0xff] }
 0x4ed   :  { %2103 = vmatmul.mubr.msk.f32.vlgmr.msra.gmra.mxu0 %vm147_vm0, %v1772_v46 }
 0x5ad   :  { %v2104_v48 = vpop.f32.mrf.mxu0 }
 0x5ae   :  { %v1862_v49 = vadd.f32 %v2104_v48, %v1922_v47 }
 0x5af   :  { %v1856_v50 = vpop.f32.mrf.mxu0 }
 0x5b0   :  { %v1866_v51 = vmax.f32 %v1862_v49, 0.0  ;;  %v1857_v52 = vadd.f32 %v1922_v47, %v1856_v50 }
 0x5b2   :  { %1868 = vst.msk [vmem:[#allocation15 + $0x8] sm:$0xff] %vm147_vm0, %v1866_v51  ;;  %v1865_v53 = vmax.f32 %v1857_v52, 0.0 }
 0x5b4   :  { %1867 = vst.msk [vmem:[#allocation15] sm:$0xff] %vm147_vm0, %v1865_v53 }
 0x5b5   :  { %2305 = shalt.err (!%p2302_p11)
}
 0x5b6   :  { %1880 = dma.vmem_to_hbm [thread:$0]  %s1875_s20, 256, %s2609_s11, [#allocation5], %s2326_s22, %s2326_s22, %s2327_s23  }
 0x5b7   :  { %2322 = dma.done.wait [#allocation5], 256  }
 0x5b8   :  { %2323 = vsyncadd [#allocation5], 4294967040 }
 0x5b9   :  { %1884 = vsyncpa [#allocation4], 1 }
 0x5ba   :  { %1885 = vsyncpa [#allocation7], 1 }
 0x5bb   :  { %1886 = vsyncpa [#allocation10], 1 }
 0x5bc   :  { %1887 = vsyncpa [#allocation13], 1 }
 0x5bd   :  { %1888 = vsyncpa [#allocation5], 1 }

</bundles_post_ra>
